<compile_context>
chip_gen: v7x
topology: tpu7x:2x2x1
jax: 0.10.0
libtpu: 0.0.40
codegen_flags: <defaults>
</compile_context>

<pallas_src>
import functools
import math

import jax
import jax.numpy as jnp
from jax.experimental import pallas as pl
from jax.experimental.pallas import tpu as pltpu


def _round_up(n, m):
    return ((n + m - 1) // m) * m


def ppo_fused_kernel(x_ref, w1_ref, b1_ref, w2_ref, b2_ref, wh_ref, bh_ref,
                     out_ref, *, action_dim):
    """One batch tile: trunk + fused actor/critic head, lane-dense output slab.

    Output lanes: [0, action_dim)      -> action probabilities
                  action_dim           -> critic value (bf16 "hi" part)
                  action_dim + 1       -> critic value residual ("lo" part)
                  rest                 -> zero padding
    """
    w_dtype = w1_ref.dtype

    # Shared trunk: Linear -> tanh -> Linear -> tanh (f32 accumulation & f32 tanh).
    h1 = jnp.tanh(
        jnp.dot(x_ref[...], w1_ref[...], preferred_element_type=jnp.float32)
        + b1_ref[...].astype(jnp.float32)
    )
    h2 = jnp.tanh(
        jnp.dot(h1.astype(w_dtype), w2_ref[...], preferred_element_type=jnp.float32)
        + b2_ref[...].astype(jnp.float32)
    )

    # Fused head: one full-width matmul. Lanes [0, action_dim) = actor logits,
    # lane action_dim = critic value, remaining lanes = zero padding.
    slab = (
        jnp.dot(h2.astype(w_dtype), wh_ref[...], preferred_element_type=jnp.float32)
        + bh_ref[...].astype(jnp.float32)
    )

    lane = jax.lax.broadcasted_iota(jnp.int32, slab.shape, 1)
    is_logit = lane < action_dim

    # Numerically stable softmax over the logit lanes only (padding -> -inf -> exp 0).
    # Exact divide (not approx reciprocal): PPO log-prob ratios are sensitive.
    masked = jnp.where(is_logit, slab, jnp.float32(-jnp.inf))
    m = jnp.max(masked, axis=-1, keepdims=True)
    e = jnp.exp(masked - m)
    denom = jnp.sum(e, axis=-1, keepdims=True)
    probs = e / denom

    # Critic value at ~f32 precision inside a bf16 slab: split into a bf16 hi
    # part and a bf16 residual; wrapper reconstructs value = hi + lo.
    value = slab[:, action_dim:action_dim + 1]                    # (tb, 1) f32
    v_hi = value.astype(jnp.bfloat16).astype(jnp.float32)         # bf16-representable
    v_lo = value - v_hi

    out = jnp.where(is_logit, probs, jnp.float32(0.0))
    out = jnp.where(lane == action_dim, v_hi, out)
    out = jnp.where(lane == action_dim + 1, v_lo, out)
    out_ref[...] = out.astype(out_ref.dtype)


def init_params(key, obs_dim, action_dim, hidden_dim):
    """PyTorch nn.Linear-style init, weights stored as (in_features, out_features)."""
    def linear(k, fan_in, fan_out):
        kw, kb = jax.random.split(k)
        bound = 1.0 / math.sqrt(fan_in)
        w = jax.random.uniform(kw, (fan_in, fan_out), jnp.float32, -bound, bound)
        b = jax.random.uniform(kb, (1, fan_out), jnp.float32, -bound, bound)
        return w, b

    k1, k2, k3, k4 = jax.random.split(key, 4)
    w1, b1 = linear(k1, obs_dim, hidden_dim)
    w2, b2 = linear(k2, hidden_dim, hidden_dim)
    wa, ba = linear(k3, hidden_dim, action_dim)
    wc, bc = linear(k4, hidden_dim, 1)
    return dict(w1=w1, b1=b1, w2=w2, b2=b2, wa=wa, ba=ba, wc=wc, bc=bc)


def pack_params(raw, obs_dim, action_dim, hidden_dim, dtype=jnp.bfloat16):
    """Pad hidden/head dims to 128 lanes and fuse the actor + critic heads.

    The observation dim is only rounded up to a sublane multiple of 8 (no
    128-lane padding). bf16 storage is the default on all generations: the
    MXU is bf16-native everywhere and all tanh/softmax/accumulation math in
    the kernel stays f32. Pass dtype=jnp.float32 for exact f32 storage.
    """
    obs_p = _round_up(obs_dim, 8)
    hid_pad = _round_up(hidden_dim, 128)
    head_pad = _round_up(action_dim + 2, 128)   # +2: value hi/lo lanes

    def pad2(a, rows, cols):
        out = jnp.zeros((rows, cols), dtype)
        return out.at[:a.shape[0], :a.shape[1]].set(a.astype(dtype))

    w1 = pad2(raw["w1"], obs_p, hid_pad)
    b1 = pad2(raw["b1"], 1, hid_pad)
    w2 = pad2(raw["w2"], hid_pad, hid_pad)
    b2 = pad2(raw["b2"], 1, hid_pad)

    wh = jnp.zeros((hid_pad, head_pad), dtype)
    wh = wh.at[:hidden_dim, :action_dim].set(raw["wa"].astype(dtype))
    wh = wh.at[:hidden_dim, action_dim:action_dim + 1].set(raw["wc"].astype(dtype))
    bh = jnp.zeros((1, head_pad), dtype)
    bh = bh.at[:, :action_dim].set(raw["ba"].astype(dtype))
    bh = bh.at[:, action_dim:action_dim + 1].set(raw["bc"].astype(dtype))

    return dict(w1=w1, b1=b1, w2=w2, b2=b2, wh=wh, bh=bh)


def ppo_policy_forward(x, packed, *, action_dim, block_b=2048, return_slab=False):
    """Run the fused PPO policy kernel. x: (B, obs_dim) float array.

    Returns (action_probs (B, action_dim) f32, value (B, 1) f32), or the raw
    lane-dense (b_pad, 128) slab if return_slab=True (consumers can fuse the
    slicing themselves and avoid the extra HBM re-read).
    """
    B, obs_dim = x.shape
    obs_p, hid_pad = packed["w1"].shape
    head_pad = packed["wh"].shape[1]
    p_dtype = packed["w1"].dtype
    sub = 16 if jnp.dtype(p_dtype).itemsize == 2 else 8   # sublane multiple

    # Batch tile: big enough to amortize ~0.35us/step overhead, but capped at
    # ceil(B/2) so mid-sized batches still produce >= 2 grid steps (lets the
    # "parallel" batch axis shard across v7x's two TensorCores).
    tb = max(sub, min(block_b, _round_up(pl.cdiv(B, 2), sub)))
    b_pad = _round_up(B, tb)

    # No 128-lane padding of the obs dim: only cast + (rarely) pad a few
    # rows/cols to sublane multiples.
    xp = x.astype(p_dtype)
    if b_pad != B or obs_p != obs_dim:
        xp = jnp.pad(xp, ((0, b_pad - B), (0, obs_p - obs_dim)))

    grid = (b_pad // tb,)
    kernel = functools.partial(ppo_fused_kernel, action_dim=action_dim)

    itemsize = jnp.dtype(p_dtype).itemsize
    flops = 2 * b_pad * (obs_p * hid_pad + hid_pad * hid_pad + hid_pad * head_pad)
    transcendentals = b_pad * (2 * hid_pad + head_pad)
    bytes_accessed = (
        xp.size * itemsize
        + sum(v.size * itemsize for v in packed.values())
        + b_pad * head_pad * itemsize
    )

    out = pl.pallas_call(
        kernel,
        out_shape=jax.ShapeDtypeStruct((b_pad, head_pad), p_dtype),
        grid_spec=pltpu.PrefetchScalarGridSpec(
            num_scalar_prefetch=0,
            grid=grid,
            in_specs=[
                pl.BlockSpec((tb, obs_p), lambda i: (i, 0)),          # x tile (pipelined)
                pl.BlockSpec((obs_p, hid_pad), lambda i: (0, 0)),     # W1 (resident)
                pl.BlockSpec((1, hid_pad), lambda i: (0, 0)),         # b1
                pl.BlockSpec((hid_pad, hid_pad), lambda i: (0, 0)),   # W2
                pl.BlockSpec((1, hid_pad), lambda i: (0, 0)),         # b2
                pl.BlockSpec((hid_pad, head_pad), lambda i: (0, 0)),  # fused head W
                pl.BlockSpec((1, head_pad), lambda i: (0, 0)),        # fused head b
            ],
            out_specs=pl.BlockSpec((tb, head_pad), lambda i: (i, 0)),
        ),
        compiler_params=pltpu.CompilerParams(
            dimension_semantics=("parallel",),
        ),
        cost_estimate=pl.CostEstimate(
            flops=flops,
            transcendentals=transcendentals,
            bytes_accessed=bytes_accessed,
        ),
    )(xp, packed["w1"], packed["b1"], packed["w2"], packed["b2"],
      packed["wh"], packed["bh"])

    if return_slab:
        # Rows >= B are padded-batch rows (softmax over bias-only logits);
        # callers must ignore them.
        return out

    probs = out[:B, :action_dim].astype(jnp.float32)
    value = (out[:B, action_dim:action_dim + 1].astype(jnp.float32)
             + out[:B, action_dim + 1:action_dim + 2].astype(jnp.float32))
    return probs, value


if __name__ == "__main__":
    # Small shapes consistent with the module's forward signature.
    B, OBS_DIM, ACTION_DIM, HIDDEN_DIM = 8, 16, 4, 64
    P_DTYPE = jnp.bfloat16   # default storage dtype on v5e/v6e/v7x

    key = jax.random.PRNGKey(0)
    k_params, k_x = jax.random.split(key)

    raw = init_params(k_params, OBS_DIM, ACTION_DIM, HIDDEN_DIM)
    packed = pack_params(raw, OBS_DIM, ACTION_DIM, HIDDEN_DIM, dtype=P_DTYPE)
    x = jax.random.normal(k_x, (B, OBS_DIM), jnp.float32)

    probs, value = ppo_policy_forward(x, packed, action_dim=ACTION_DIM)
    jax.block_until_ready((probs, value))

    # Pure-JAX reference mirroring the kernel's quantization points
    # (bf16 storage, f32 accumulation / tanh / softmax).
    def qb(a):
        return a.astype(P_DTYPE).astype(jnp.float32)

    xq = qb(x)
    h1 = jnp.tanh(xq @ qb(raw["w1"]) + qb(raw["b1"]))
    h2 = jnp.tanh(qb(h1) @ qb(raw["w2"]) + qb(raw["b2"]))
    logits = qb(h2) @ qb(raw["wa"]) + qb(raw["ba"])
    ref_probs = jax.nn.softmax(logits, axis=-1)
    ref_value = qb(h2) @ qb(raw["wc"]) + qb(raw["bc"])

    assert probs.shape == (B, ACTION_DIM) and value.shape == (B, 1)
    # Value is reconstructed from a bf16 (hi, lo) pair -> ~f32 precision.
    assert jnp.allclose(value, ref_value, atol=1e-3, rtol=1e-3)
    # Probs are stored bf16 in the output slab (abs error <~ 4e-3).
    assert jnp.allclose(probs, ref_probs, atol=1e-2, rtol=1e-2)
    assert jnp.allclose(jnp.sum(probs, axis=-1), 1.0, atol=2e-2)

    # TODO(synk): Categorical sampling / log_prob / entropy (get_action_and_value,
    # evaluate_actions) are left to plain JAX on top of the returned probs/value.
    print("KERNEL_OK")
</pallas_src>

<mosaic_0001>
module attributes {stable_mosaic.version = 11 : i64} {
  func.func @ppo_fused_kernel(%arg0: i32, %arg1: memref<16x16xbf16, #tpu.memory_space<vmem>>, %arg2: memref<16x128xbf16, #tpu.memory_space<vmem>>, %arg3: memref<1x128xbf16, #tpu.memory_space<vmem>>, %arg4: memref<128x128xbf16, #tpu.memory_space<vmem>>, %arg5: memref<1x128xbf16, #tpu.memory_space<vmem>>, %arg6: memref<128x128xbf16, #tpu.memory_space<vmem>>, %arg7: memref<1x128xbf16, #tpu.memory_space<vmem>>, %arg8: memref<16x128xbf16, #tpu.memory_space<vmem>>) attributes {dimension_semantics = [#tpu.dimension_semantics<parallel>], iteration_bounds = array<i64: 1>, scalar_prefetch = 0 : i64, scratch_operands = 0 : i64, tpu.core_type = #tpu.core_type<tc>, window_params = [{transform_indices = @transform_0, window_bounds = array<i64: 16, 16>}, {pipeline_mode = #tpu.pipeline_mode<synchronous>, transform_indices = @transform_1, window_bounds = array<i64: 16, 128>}, {pipeline_mode = #tpu.pipeline_mode<synchronous>, transform_indices = @transform_2, window_bounds = array<i64: 1, 128>}, {pipeline_mode = #tpu.pipeline_mode<synchronous>, transform_indices = @transform_3, window_bounds = array<i64: 128, 128>}, {pipeline_mode = #tpu.pipeline_mode<synchronous>, transform_indices = @transform_4, window_bounds = array<i64: 1, 128>}, {pipeline_mode = #tpu.pipeline_mode<synchronous>, transform_indices = @transform_5, window_bounds = array<i64: 128, 128>}, {pipeline_mode = #tpu.pipeline_mode<synchronous>, transform_indices = @transform_6, window_bounds = array<i64: 1, 128>}, {transform_indices = @transform_7, window_bounds = array<i64: 16, 128>}]} {
    %c0 = arith.constant 0 : index
    %c0_0 = arith.constant 0 : index
    %0 = vector.load %arg1[%c0, %c0_0] : memref<16x16xbf16, #tpu.memory_space<vmem>>, vector<16x16xbf16>
    %c0_1 = arith.constant 0 : index
    %c0_2 = arith.constant 0 : index
    %1 = vector.load %arg2[%c0_1, %c0_2] : memref<16x128xbf16, #tpu.memory_space<vmem>>, vector<16x128xbf16>
    %cst = arith.constant dense<0.000000e+00> : vector<16x128xf32>
    %2 = tpu.matmul %0, %1, %cst {dimension_numbers = #tpu.dot_dimension_numbers<[1], [0], [0], [1], [0, 0, 1, 1], [], []>} : vector<16x16xbf16>, vector<16x128xbf16>, vector<16x128xf32> -> vector<16x128xf32>
    %c0_3 = arith.constant 0 : index
    %c0_4 = arith.constant 0 : index
    %3 = vector.load %arg3[%c0_3, %c0_4] : memref<1x128xbf16, #tpu.memory_space<vmem>>, vector<1x128xbf16>
    %4 = arith.extf %3 : vector<1x128xbf16> to vector<1x128xf32>
    %5 = vector.broadcast %4 : vector<1x128xf32> to vector<16x128xf32>
    %6 = arith.addf %2, %5 : vector<16x128xf32>
    %7 = math.tanh %6 : vector<16x128xf32>
    %8 = arith.truncf %7 : vector<16x128xf32> to vector<16x128xbf16>
    %c0_5 = arith.constant 0 : index
    %c0_6 = arith.constant 0 : index
    %9 = vector.load %arg4[%c0_5, %c0_6] : memref<128x128xbf16, #tpu.memory_space<vmem>>, vector<128x128xbf16>
    %cst_7 = arith.constant dense<0.000000e+00> : vector<16x128xf32>
    %10 = tpu.matmul %8, %9, %cst_7 {dimension_numbers = #tpu.dot_dimension_numbers<[1], [0], [0], [1], [0, 0, 1, 1], [], []>} : vector<16x128xbf16>, vector<128x128xbf16>, vector<16x128xf32> -> vector<16x128xf32>
    %c0_8 = arith.constant 0 : index
    %c0_9 = arith.constant 0 : index
    %11 = vector.load %arg5[%c0_8, %c0_9] : memref<1x128xbf16, #tpu.memory_space<vmem>>, vector<1x128xbf16>
    %12 = arith.extf %11 : vector<1x128xbf16> to vector<1x128xf32>
    %13 = vector.broadcast %12 : vector<1x128xf32> to vector<16x128xf32>
    %14 = arith.addf %10, %13 : vector<16x128xf32>
    %15 = math.tanh %14 : vector<16x128xf32>
    %16 = arith.truncf %15 : vector<16x128xf32> to vector<16x128xbf16>
    %c0_10 = arith.constant 0 : index
    %c0_11 = arith.constant 0 : index
    %17 = vector.load %arg6[%c0_10, %c0_11] : memref<128x128xbf16, #tpu.memory_space<vmem>>, vector<128x128xbf16>
    %cst_12 = arith.constant dense<0.000000e+00> : vector<16x128xf32>
    %18 = tpu.matmul %16, %17, %cst_12 {dimension_numbers = #tpu.dot_dimension_numbers<[1], [0], [0], [1], [0, 0, 1, 1], [], []>} : vector<16x128xbf16>, vector<128x128xbf16>, vector<16x128xf32> -> vector<16x128xf32>
    %c0_13 = arith.constant 0 : index
    %c0_14 = arith.constant 0 : index
    %19 = vector.load %arg7[%c0_13, %c0_14] : memref<1x128xbf16, #tpu.memory_space<vmem>>, vector<1x128xbf16>
    %20 = arith.extf %19 : vector<1x128xbf16> to vector<1x128xf32>
    %21 = vector.broadcast %20 : vector<1x128xf32> to vector<16x128xf32>
    %22 = arith.addf %18, %21 : vector<16x128xf32>
    %23 = tpu.iota {dimensions = array<i32: 1>} : vector<16x128xi32>
    %c4_i32 = arith.constant 4 : i32
    %24 = vector.broadcast %c4_i32 : i32 to vector<16x128xi32>
    %25 = arith.cmpi slt, %23, %24 : vector<16x128xi32>
    %cst_15 = arith.constant 0xFF800000 : f32
    %26 = vector.broadcast %cst_15 : f32 to vector<16x128xf32>
    %27 = arith.select %25, %22, %26 : vector<16x128xi1>, vector<16x128xf32>
    %cst_16 = arith.constant dense<0xFF800000> : vector<16xf32>
    %28 = vector.multi_reduction <maximumf>, %27, %cst_16 [1] : vector<16x128xf32> to vector<16xf32>
    %29 = vector.shape_cast %28 : vector<16xf32> to vector<16x1xf32>
    %30 = vector.broadcast %29 : vector<16x1xf32> to vector<16x128xf32>
    %31 = arith.subf %27, %30 : vector<16x128xf32>
    %32 = math.exp %31 : vector<16x128xf32>
    %cst_17 = arith.constant dense<0.000000e+00> : vector<16xf32>
    %33 = vector.multi_reduction <add>, %32, %cst_17 [1] : vector<16x128xf32> to vector<16xf32>
    %34 = vector.shape_cast %33 : vector<16xf32> to vector<16x1xf32>
    %35 = vector.broadcast %34 : vector<16x1xf32> to vector<16x128xf32>
    %36 = arith.divf %32, %35 : vector<16x128xf32>
    %37 = vector.extract_strided_slice %22 {offsets = [0, 4], sizes = [16, 1], strides = [1, 1]} : vector<16x128xf32> to vector<16x1xf32>
    %38 = arith.truncf %37 : vector<16x1xf32> to vector<16x1xbf16>
    %39 = arith.extf %38 : vector<16x1xbf16> to vector<16x1xf32>
    %40 = arith.subf %37, %39 : vector<16x1xf32>
    %cst_18 = arith.constant 0.000000e+00 : f32
    %41 = vector.broadcast %cst_18 : f32 to vector<16x128xf32>
    %42 = arith.select %25, %36, %41 : vector<16x128xi1>, vector<16x128xf32>
    %c4_i32_19 = arith.constant 4 : i32
    %43 = vector.broadcast %c4_i32_19 : i32 to vector<16x128xi32>
    %44 = arith.cmpi eq, %23, %43 : vector<16x128xi32>
    %45 = vector.shape_cast %39 : vector<16x1xf32> to vector<16x1xf32>
    %46 = vector.broadcast %45 : vector<16x1xf32> to vector<16x128xf32>
    %47 = arith.select %44, %46, %42 : vector<16x128xi1>, vector<16x128xf32>
    %c5_i32 = arith.constant 5 : i32
    %48 = vector.broadcast %c5_i32 : i32 to vector<16x128xi32>
    %49 = arith.cmpi eq, %23, %48 : vector<16x128xi32>
    %50 = vector.shape_cast %40 : vector<16x1xf32> to vector<16x1xf32>
    %51 = vector.broadcast %50 : vector<16x1xf32> to vector<16x128xf32>
    %52 = arith.select %49, %51, %47 : vector<16x128xi1>, vector<16x128xf32>
    %53 = arith.truncf %52 : vector<16x128xf32> to vector<16x128xbf16>
    %c0_20 = arith.constant 0 : index
    %c0_21 = arith.constant 0 : index
    %54 = vector.load %arg8[%c0_20, %c0_21] : memref<16x128xbf16, #tpu.memory_space<vmem>>, vector<16x128xbf16>
    tpu.vector_store %arg8[%c0_20, %c0_21], %53 {strides = array<i32>} : memref<16x128xbf16, #tpu.memory_space<vmem>>, vector<16x128xbf16>,
    return
  }
  func.func @transform_0(%arg0: i32) -> (i32, i32) {
    %c0_i32 = arith.constant 0 : i32
    %c0_i32_0 = arith.constant 0 : i32
    return %arg0, %c0_i32 : i32, i32
  }
  func.func @transform_1(%arg0: i32) -> (i32, i32) {
    %c0_i32 = arith.constant 0 : i32
    %c0_i32_0 = arith.constant 0 : i32
    %c0_i32_1 = arith.constant 0 : i32
    return %c0_i32, %c0_i32_0 : i32, i32
  }
  func.func @transform_2(%arg0: i32) -> (i32, i32) {
    %c0_i32 = arith.constant 0 : i32
    %c0_i32_0 = arith.constant 0 : i32
    %c0_i32_1 = arith.constant 0 : i32
    return %c0_i32, %c0_i32_0 : i32, i32
  }
  func.func @transform_3(%arg0: i32) -> (i32, i32) {
    %c0_i32 = arith.constant 0 : i32
    %c0_i32_0 = arith.constant 0 : i32
    %c0_i32_1 = arith.constant 0 : i32
    return %c0_i32, %c0_i32_0 : i32, i32
  }
  func.func @transform_4(%arg0: i32) -> (i32, i32) {
    %c0_i32 = arith.constant 0 : i32
    %c0_i32_0 = arith.constant 0 : i32
    %c0_i32_1 = arith.constant 0 : i32
    return %c0_i32, %c0_i32_0 : i32, i32
  }
  func.func @transform_5(%arg0: i32) -> (i32, i32) {
    %c0_i32 = arith.constant 0 : i32
    %c0_i32_0 = arith.constant 0 : i32
    %c0_i32_1 = arith.constant 0 : i32
    return %c0_i32, %c0_i32_0 : i32, i32
  }
  func.func @transform_6(%arg0: i32) -> (i32, i32) {
    %c0_i32 = arith.constant 0 : i32
    %c0_i32_0 = arith.constant 0 : i32
    %c0_i32_1 = arith.constant 0 : i32
    return %c0_i32, %c0_i32_0 : i32, i32
  }
  func.func @transform_7(%arg0: i32) -> (i32, i32) {
    %c0_i32 = arith.constant 0 : i32
    %c0_i32_0 = arith.constant 0 : i32
    return %arg0, %c0_i32 : i32, i32
  }
}

</mosaic_0001>

<bundles_post_ra>
// kernel: tpu_custom_call.1
= control target key start
LH: loop header
LB: loop body
LE: loop exit
PB: predicated region body
PF: predicated region fallthrough
CT: control target
= control target key end

     0   :  { %12 = vsyncpa [#allocation3], 0  ;;  %s902_s0 = inlined_call_operand.hbm [shape: bf16[16,16], index: 0, kind: input, shape index: {}]   ;;  %s903_s1 = inlined_call_operand.hbm [shape: bf16[16,128], index: 1, kind: input, shape index: {}]   ;;  %s904_s2 = inlined_call_operand.vmem [shape: bf16[1,128], index: 2, kind: input, shape index: {}]   ;;  %s905_s3 = inlined_call_operand.hbm [shape: bf16[128,128], index: 3, kind: input, shape index: {}]   ;;  %s906_s4 = inlined_call_operand.vmem [shape: bf16[1,128], index: 4, kind: input, shape index: {}]   ;;  %s907_s5 = inlined_call_operand.hbm [shape: bf16[128,128], index: 5, kind: input, shape index: {}]   ;;  %s908_s6 = inlined_call_operand.vmem [shape: bf16[1,128], index: 6, kind: input, shape index: {}]   ;;  %s909_s7 = inlined_call_operand.hbm [shape: bf16[16,128], index: 7, kind: output, shape index: {}]  }
   0x1   :  { %13 = vsyncpa [#allocation6], 0 }
   0x2   :  { %14 = vsyncpa [#allocation9], 0 }
   0x3   :  { %15 = vsyncpa [#allocation4], 0  ;;  %s730_s24 = smov [#allocation5]   ;;  %s731_s26 = smov [#allocation2]  }
   0x4   :  { %s33_s25 = sshll.u32 %s730_s24, 4  ;;  %s21_s27 = sshll.u32 %s731_s26, 4  ;;  %s34_s25 = int_to_ptr.vmem [resolvable:$true] %s33_s25  ;;  %s780_s27 = int_to_ptr.vmem [resolvable:$true] %s21_s27 }
   0x5   :  { %s612_s30 = scalar_lea.hbm %s903_s1, 128 }
   0x6   :  { %p613_p0 = scmp.ne.s32.totalorder %s903_s1, %s612_s30  ;;  %p616_p1 = scmp.lt.u32.totalorder %s612_s30, %s903_s1 }
   0x8   :  { %p618_p2 = pnand %p616_p1, %p613_p0 }
   0xa   :  { %621 = shalt.err (!%p618_p2)
}
   0xb   :  { %s622_s12 = scalar_lea.vmem %s34_s25, 128  ;;  %p627_p4 = scmp.lt.s32.totalorder %s34_s25, %s34_s25 }
   0xc   :  { %p623_p3 = scmp.ne.s32.totalorder %s34_s25, %s622_s12  ;;  %p628_p5 = scmp.lt.s32.totalorder %s622_s12, %s622_s12 }
   0xe   :  { %p629_p6 = por %p628_p5, %p627_p4 }
  0x10   :  { %p630_p7 = pnand %p629_p6, %p623_p3 }
  0x12   :  { %633 = shalt.err (!%p630_p7)
}
  0x13   :  { %s732_s13 = smov 64   ;;  %s733_s14 = smov 4  }
  0x14   :  { %39 = dma.hbm_to_vmem [thread:$0]  %s903_s1, 128, %s34_s25, [#allocation6], %s732_s13, %s732_s13, %s733_s14  }
  0x15   :  { %s634_s19 = scalar_lea.hbm %s902_s0, 128 }
  0x16   :  { %p635_p8 = scmp.ne.s32.totalorder %s902_s0, %s634_s19  ;;  %p638_p9 = scmp.lt.u32.totalorder %s634_s19, %s902_s0 }
  0x18   :  { %p640_p10 = pnand %p638_p9, %p635_p8 }
  0x1a   :  { %643 = shalt.err (!%p640_p10)
}
  0x1b   :  { %s644_s24 = scalar_lea.vmem %s780_s27, 128  ;;  %p649_p12 = scmp.lt.s32.totalorder %s780_s27, %s780_s27 }
  0x1c   :  { %p645_p11 = scmp.ne.s32.totalorder %s780_s27, %s644_s24  ;;  %p650_p13 = scmp.lt.s32.totalorder %s644_s24, %s644_s24 }
  0x1e   :  { %p651_p0 = por %p650_p13, %p649_p12 }
  0x20   :  { %p652_p1 = pnand %p651_p0, %p645_p11 }
  0x22   :  { %655 = shalt.err (!%p652_p1)
}
  0x23   :  { %27 = dma.hbm_to_vmem [thread:$0]  %s902_s0, 128, %s780_s27, [#allocation3], %s732_s13, %s732_s13, %s733_s14  }
  0x24   :  { %s734_s26 = smov [#allocation7]   ;;  %s735_s29 = smov [#allocation8]  }
  0x25   :  { %s47_s28 = sshll.u32 %s734_s26, 4  ;;  %s61_s30 = sshll.u32 %s735_s29, 4  ;;  %s48_s28 = int_to_ptr.vmem [resolvable:$true] %s47_s28  ;;  %s817_s30 = int_to_ptr.vmem [resolvable:$true] %s61_s30 }
  0x26   :  { %s656_s10 = scalar_lea.hbm %s905_s3, 1024 }
  0x27   :  { %p657_p2 = scmp.ne.s32.totalorder %s905_s3, %s656_s10  ;;  %p660_p3 = scmp.lt.u32.totalorder %s656_s10, %s905_s3 }
  0x29   :  { %p662_p4 = pnand %p660_p3, %p657_p2 }
  0x2b   :  { %665 = shalt.err (!%p662_p4)
}
  0x2c   :  { %s666_s0 = scalar_lea.vmem %s48_s28, 1024  ;;  %p671_p6 = scmp.lt.s32.totalorder %s48_s28, %s48_s28 }
  0x2d   :  { %p667_p5 = scmp.ne.s32.totalorder %s48_s28, %s666_s0  ;;  %p672_p7 = scmp.lt.s32.totalorder %s666_s0, %s666_s0 }
  0x2f   :  { %p673_p8 = por %p672_p7, %p671_p6 }
  0x31   :  { %p674_p9 = pnand %p673_p8, %p667_p5 }
  0x33   :  { %677 = shalt.err (!%p674_p9)
}
  0x34   :  { %53 = dma.hbm_to_vmem [thread:$0]  %s905_s3, 1024, %s48_s28, [#allocation6], %s732_s13, %s732_s13, %s733_s14  }
  0x35   :  { %s678_s20 = scalar_lea.hbm %s907_s5, 1024 }
  0x36   :  { %p679_p10 = scmp.ne.s32.totalorder %s907_s5, %s678_s20  ;;  %p682_p11 = scmp.lt.u32.totalorder %s678_s20, %s907_s5 }
  0x38   :  { %p684_p12 = pnand %p682_p11, %p679_p10 }
  0x3a   :  { %687 = shalt.err (!%p684_p12)
}
  0x3b   :  { %s688_s1 = scalar_lea.vmem %s817_s30, 1024  ;;  %p693_p0 = scmp.lt.s32.totalorder %s817_s30, %s817_s30 }
  0x3c   :  { %p689_p13 = scmp.ne.s32.totalorder %s817_s30, %s688_s1  ;;  %p694_p1 = scmp.lt.s32.totalorder %s688_s1, %s688_s1 }
  0x3e   :  { %p695_p2 = por %p694_p1, %p693_p0 }
  0x40   :  { %p696_p3 = pnand %p695_p2, %p689_p13 }
  0x42   :  { %699 = shalt.err (!%p696_p3)
}
  0x43   :  { %67 = dma.hbm_to_vmem [thread:$0]  %s907_s5, 1024, %s817_s30, [#allocation9], %s732_s13, %s732_s13, %s733_s14  }
  0x44   :  { %722 = dma.done.wait [#allocation3], 128  }
  0x45   :  { %723 = vsyncadd [#allocation3], 4294967168 }
  0x46   :  { %724 = dma.done.wait [#allocation6], 1152  }
  0x47   :  { %725 = vsyncadd [#allocation6], 4294966144 }
  0x48   :  { %726 = dma.done.wait [#allocation9], 1024  }
  0x49   :  { %727 = vsyncadd [#allocation9], 4294966272  ;;  %v736_v0 = vmov 0.0   ;;  %vm737_vm0 = vmmov 0   ;;  %v578_v1 = vld [vmem:[#allocation5] sm:$0xff]   ;;  %v579_v2 = vld [vmem:[#allocation2] sm:$0xff]   ;;  %v89_v15 = vlaneseq }
  0x4a   :  { %510 = vmatprep.subr.bf16.mxu0 %v736_v0  ;;  %512 = vmatprep.mubr.msk.bf16.mxu0 %vm737_vm0, %v736_v0  ;;  %vm104_vm1 = vcmask 130048   ;;  %v580_v3 = vld [vmem:[#allocation7] sm:$0xff]   ;;  %v581_v4 = vld [vmem:[#allocation7 + $0x8] sm:$0xff]   ;;  %v582_v5 = vld [vmem:[#allocation7 + $0x10] sm:$0xff]   ;;  %v738_v46 = vmov 4  }
  0x4b   :  { %516 = vmatprep.subr.bf16.mxu1 %v736_v0  ;;  %532 = vmatprep.mubr.msk.bf16.mxu1 %vm737_vm0, %v736_v0  ;;  %v583_v6 = vld [vmem:[#allocation7 + $0x18] sm:$0xff]   ;;  %v584_v7 = vld [vmem:[#allocation7 + $0x20] sm:$0xff]   ;;  %v585_v8 = vld [vmem:[#allocation7 + $0x28] sm:$0xff]   ;;  %v90_v16 = vshrl.u32 %v89_v15, 7  ;;  %v378_v49 = vand.u32 127, %v89_v15 }
  0x4c   :  { %511 = vmatpush3.bf16.msra.mxu0 %v578_v1  ;;  %517 = vmatpush3.bf16.msra.mxu1 %v580_v3  ;;  %v586_v9 = vld [vmem:[#allocation7 + $0x30] sm:$0xff]   ;;  %v587_v10 = vld [vmem:[#allocation7 + $0x38] sm:$0xff]   ;;  %v588_v11 = vld [vmem:[#allocation8] sm:$0xff]  }
  0x4d   :  { %536 = vmatprep.subr.bf16.mxu0 %v736_v0  ;;  %518 = vmatprep.subr.bf16.mxu1 %v736_v0  ;;  %v589_v12 = vld [vmem:[#allocation8 + $0x8] sm:$0xff]   ;;  %v590_v13 = vld [vmem:[#allocation8 + $0x10] sm:$0xff]   ;;  %v591_v14 = vld [vmem:[#allocation8 + $0x18] sm:$0xff]   ;;  %v91_v19 = vsub.s32 0, %v90_v16  ;;  %vm379_vm2 = vcmp.lt.s32.totalorder %v378_v49, 4  ;;  %vm407_vm3 = vcmp.eq.s32.totalorder %v378_v49, 4 }
  0x4e   :  { %v87_v17 = vld [vmem:[%s904_s2] sm:$0x1]  ;;  %v592_v30 = vld [vmem:[#allocation8 + $0x20] sm:$0xff]   ;;  %v593_v31 = vld [vmem:[#allocation8 + $0x28] sm:$0xff]   ;;  %566 = vset.pattern.permute.xlu0 %v738_v46  ;;  %572 = vset.pattern.permute.xlu1 %v738_v46  ;;  %vm420_vm4 = vcmp.eq.s32.totalorder %v378_v49, 5 }
  0x4f   :  { %513 = vmatmul.mubr.msk.bf16.vlgmr.msra.gmra.mrb[0].mxu0 %vm104_vm1, %v579_v2  ;;  %v88_v18 = vunpack.c.l.bf16 %v87_v17  ;;  %v594_v32 = vld [vmem:[#allocation8 + $0x30] sm:$0xff]   ;;  %v595_v33 = vld [vmem:[#allocation8 + $0x38] sm:$0xff]  }
  0x50   :  { %552 = vmatprep.mubr.msk.bf16.mxu0 %vm737_vm0, %v736_v0  ;;  %519 = vmatpush3.bf16.msra.mxu1 %v581_v4  ;;  %v168_v34 = vld [vmem:[%s906_s4] sm:$0x1]  ;;  %s739_s4 = smov [#allocation10]  }
  0x51   :  { %520 = vmatprep.subr.bf16.mxu1 %v736_v0  ;;  %537 = vmatpush3.bf16.msra.mxu0 %v588_v11  ;;  %v92_v20 = vrot.slane %v88_v18, %v91_v19  ;;  %v169_v35 = vunpack.c.l.bf16 %v168_v34  ;;  %v282_v47 = vld [vmem:[%s908_s6] sm:$0x1]  ;;  %s448_s6 = sshll.u32 %s739_s4, 4  ;;  %s449_s6 = int_to_ptr.vmem [resolvable:$true] %s448_s6 }
  0x52   :  { %538 = vmatprep.subr.bf16.mxu0 %v736_v0  ;;  %v283_v48 = vunpack.c.l.bf16 %v282_v47  ;;  %s700_s8 = scalar_lea.vmem %s449_s6, 128  ;;  %p705_p5 = scmp.lt.s32.totalorder %s449_s6, %s449_s6 }
  0x53   :  { %v173_v36 = vrot.slane %v169_v35, %v91_v19  ;;  %p701_p4 = scmp.ne.s32.totalorder %s449_s6, %s700_s8  ;;  %p706_p6 = scmp.lt.s32.totalorder %s700_s8, %s700_s8 }
  0x54   :  { %521 = vmatpush3.bf16.msra.mxu1 %v582_v5  ;;  %v287_v50 = vrot.slane %v283_v48, %v91_v19 }
  0x55   :  { %522 = vmatprep.subr.bf16.mxu1 %v736_v0  ;;  %539 = vmatpush3.bf16.msra.mxu0 %v589_v12  ;;  %p707_p7 = por %p706_p6, %p705_p5 }
  0x56   :  { %540 = vmatprep.subr.bf16.mxu0 %v736_v0 }
  0x57   :  { %p708_p8 = pnand %p707_p7, %p701_p4 }
  0x58   :  { %523 = vmatpush3.bf16.msra.mxu1 %v583_v6 }
  0x59   :  { %524 = vmatprep.subr.bf16.mxu1 %v736_v0  ;;  %541 = vmatpush3.bf16.msra.mxu0 %v590_v13 }
  0x5a   :  { %542 = vmatprep.subr.bf16.mxu0 %v736_v0 }
  0x5c   :  { %525 = vmatpush3.bf16.msra.mxu1 %v584_v7 }
  0x5d   :  { %526 = vmatprep.subr.bf16.mxu1 %v736_v0  ;;  %543 = vmatpush3.bf16.msra.mxu0 %v591_v14 }
  0x5e   :  { %544 = vmatprep.subr.bf16.mxu0 %v736_v0 }
  0x60   :  { %527 = vmatpush3.bf16.msra.mxu1 %v585_v8 }
  0x61   :  { %528 = vmatprep.subr.bf16.mxu1 %v736_v0  ;;  %545 = vmatpush3.bf16.msra.mxu0 %v592_v30 }
  0x62   :  { %546 = vmatprep.subr.bf16.mxu0 %v736_v0 }
  0x64   :  { %529 = vmatpush3.bf16.msra.mxu1 %v586_v9 }
  0x65   :  { %530 = vmatprep.subr.bf16.mxu1 %v736_v0  ;;  %547 = vmatpush3.bf16.msra.mxu0 %v593_v31 }
  0x66   :  { %548 = vmatprep.subr.bf16.mxu0 %v736_v0 }
  0x68   :  { %531 = vmatpush3.bf16.msra.mxu1 %v587_v10 }
  0x69   :  { %549 = vmatpush3.bf16.msra.mxu0 %v594_v32 }
  0x6a   :  { %550 = vmatprep.subr.bf16.mxu0 %v736_v0 }
  0x6d   :  { %551 = vmatpush3.bf16.msra.mxu0 %v595_v33 }
 0x122   :  { %v142_v21 = vpop.f32.mrb[0].mxu0 }
 0x123   :  { %v143_v22 = vadd.f32 %v142_v21, %v92_v20  ;;  %v514_v23 = vpop.f32.mrb[1].mxu0 }
 0x124   :  { %v145_v24 = vpop.f32.mrb[2].mxu0 }
 0x125   :  { %v146_v25 = vadd.f32 %v145_v24, %v92_v20  ;;  %v515_v26 = vpop.f32.mrb[3].mxu0  ;;  %596 = vtanh.f32 %v143_v22 }
 0x127   :  { %598 = vtanh.f32 %v146_v25 }
 0x12f   :  { %v597_v27 = vpop.eup %596 }
 0x131   :  { %v599_v28 = vpop.eup %598 }
 0x132   :  { %v151_v29 = vpack.c.bf16 %v599_v28, %v597_v27 }
 0x134   :  { %533 = vmatmul.mubr.bf16.vlgmr.msra.gmra.mrb[0].mxu1 %v151_v29 }
 0x207   :  { %v256_v37 = vpop.f32.mrb[0].mxu1 }
 0x208   :  { %v257_v38 = vadd.f32 %v256_v37, %v173_v36  ;;  %v534_v39 = vpop.f32.mrb[1].mxu1 }
 0x209   :  { %v259_v40 = vpop.f32.mrb[2].mxu1 }
 0x20a   :  { %v260_v41 = vadd.f32 %v259_v40, %v173_v36  ;;  %v535_v42 = vpop.f32.mrb[3].mxu1  ;;  %600 = vtanh.f32 %v257_v38 }
 0x20c   :  { %602 = vtanh.f32 %v260_v41 }
 0x214   :  { %v601_v43 = vpop.eup %600 }
 0x216   :  { %v603_v44 = vpop.eup %602 }
 0x217   :  { %v265_v45 = vpack.c.bf16 %v603_v44, %v601_v43 }
 0x219   :  { %553 = vmatmul.mubr.bf16.vlgmr.msra.gmra.mrb[4].mxu0 %v265_v45 }
 0x2ec   :  { %v370_v51 = vpop.f32.mrb[4].mxu0 }
 0x2ed   :  { %v371_v52 = vadd.f32 %v370_v51, %v287_v50  ;;  %v554_v53 = vpop.f32.mrb[5].mxu0 }
 0x2ee   :  { %v373_v54 = vpop.f32.mrb[6].mxu0 }
 0x2ef   :  { %v374_v55 = vadd.f32 %v373_v54, %v287_v50  ;;  %v555_v56 = vpop.f32.mrb[7].mxu0  ;;  %v380_v57 = vsel %vm379_vm2, %v371_v52, -inf }
 0x2f0   :  { %382 = vmax.xlane.f32.xlu0 %v380_v57 }
 0x2f1   :  { %v400_v58 = vpack.c.bf16 %v374_v55, %v371_v52  ;;  %v381_v60 = vsel %vm379_vm2, %v374_v55, -inf }
 0x2f3   :  { %v402_v59 = vunpack.c.h.bf16 %v400_v58  ;;  %v401_v61 = vunpack.c.l.bf16 %v400_v58 }
 0x2f4   :  { %384 = vmax.xlane.f32.xlu0 %v381_v60 }
 0x2f5   :  { %v404_v62 = vsub.f32 %v374_v55, %v402_v59  ;;  %v403_v63 = vsub.f32 %v371_v52, %v401_v61  ;;  %v567_v1 = vpack.i.bf16 %v402_v59, %v401_v61 }
 0x2f7   :  { %v573_v0 = vpack.i.bf16 %v404_v62, %v403_v63 }
 0x30a   :  { %568 = vperm.xlu0 %566, %v567_v1  }
 0x37d   :  { %v383_v2 = vpop.xlane.xlu0 %382 }
 0x37e   :  { %v386_v3 = vsub.f32 %v380_v57, %v383_v2 }
 0x380   :  { %v388_v4 = vmul.f32 1.442695, %v386_v3 }
 0x381   :  { %v385_v5 = vpop.xlane.xlu0 %384 }
 0x382   :  { %604 = vpow2.f32 %v388_v4  ;;  %v387_v6 = vsub.f32 %v381_v60, %v385_v5 }
 0x384   :  { %v390_v7 = vmul.f32 1.442695, %v387_v6 }
 0x386   :  { %606 = vpow2.f32 %v390_v7 }
 0x389   :  { %v569_v13 = vpop.permute.xlu0 %568 }
 0x38a   :  { %v570_v17 = vunpack.i.l.bf16 %v569_v13  ;;  %v571_v20 = vunpack.i.h.bf16 %v569_v13 }
 0x38c   :  { %v605_v8 = vpop.eup %604 }
 0x38d   :  { %392 = vadd.xlane.f32.xlu1 %v605_v8 }
 0x390   :  { %v607_v9 = vpop.eup %606 }
 0x391   :  { %394 = vadd.xlane.f32.xlu1 %v607_v9 }
 0x3a2   :  { %574 = vperm.xlu1 %572, %v573_v0  }
 0x41a   :  { %v393_v10 = vpop.xlane.xlu1 %392 }
 0x41b   :  { %608 = vrcp.f32 %v393_v10 }
 0x41e   :  { %v395_v11 = vpop.xlane.xlu1 %394 }
 0x41f   :  { %610 = vrcp.f32 %v395_v11 }
 0x422   :  { %v575_v18 = vpop.permute.xlu1 %574 }
 0x423   :  { %v577_v22 = vunpack.i.h.bf16 %v575_v18  ;;  %v576_v23 = vunpack.i.l.bf16 %v575_v18 }
 0x425   :  { %v609_v12 = vpop.eup %608 }
 0x426   :  { %v397_v14 = vmul.f32 %v609_v12, %v605_v8 }
 0x428   :  { %v405_v15 = vsel %vm379_vm2, %v397_v14, 0.0 }
 0x429   :  { %v611_v16 = vpop.eup %610  ;;  %v418_v21 = vsel %vm407_vm3, %v570_v17, %v405_v15 }
 0x42a   :  { %v399_v19 = vmul.f32 %v611_v16, %v607_v9  ;;  %v431_v26 = vsel %vm420_vm4, %v576_v23, %v418_v21 }
 0x42c   :  { %v406_v24 = vsel %vm379_vm2, %v399_v19, 0.0 }
 0x42d   :  { %v419_v25 = vsel %vm407_vm3, %v571_v20, %v406_v24 }
 0x42e   :  { %v432_v27 = vsel %vm420_vm4, %v577_v22, %v419_v25 }
 0x42f   :  { %v488_v28 = vpack.c.bf16 %v432_v27, %v431_v26 }
 0x431   :  { %489 = vst [vmem:[#allocation10] sm:$0xff] %v488_v28  }
 0x432   :  { %711 = shalt.err (!%p708_p8)
}
 0x433   :  { %s712_s11 = scalar_lea.hbm %s909_s7, 128 }
 0x434   :  { %p713_p9 = scmp.ne.s32.totalorder %s909_s7, %s712_s11  ;;  %p716_p10 = scmp.lt.u32.totalorder %s712_s11, %s909_s7 }
 0x436   :  { %p718_p11 = pnand %p716_p10, %p713_p9 }
 0x438   :  { %721 = shalt.err (!%p718_p11)
}
 0x439   :  { %454 = dma.vmem_to_hbm [thread:$0]  %s449_s6, 128, %s909_s7, [#allocation4], %s732_s13, %s732_s13, %s733_s14  }
 0x43a   :  { %728 = dma.done.wait [#allocation4], 128  }
 0x43b   :  { %729 = vsyncadd [#allocation4], 4294967168 }
 0x43c   :  { %458 = vsyncpa [#allocation3], 1 }
 0x43d   :  { %459 = vsyncpa [#allocation6], 1 }
 0x43e   :  { %460 = vsyncpa [#allocation9], 1 }
 0x43f   :  { %461 = vsyncpa [#allocation4], 1 }

</bundles_post_ra>
